<compile_context>
chip_gen: v7x
topology: tpu7x:2x2x1
jax: 0.10.0
libtpu: 0.0.40
codegen_flags: <defaults>
</compile_context>

<pallas_src>
import math
from functools import partial

import jax
import jax.numpy as jnp
from jax.experimental import pallas as pl
from jax.experimental.pallas import tpu as pltpu

IN_FEATURES = 4
HIDDEN = 64
LANE = 128


def _round_up(n, m):
    return ((n + m - 1) // m) * m


def _xavier_uniform(key, out_features, in_features):
    # Matches torch.nn.init.xavier_uniform_ (gain=1) for a Linear weight of
    # shape (out_features, in_features).
    limit = math.sqrt(6.0 / (in_features + out_features))
    return jax.random.uniform(
        key, (out_features, in_features), dtype=jnp.float32,
        minval=-limit, maxval=limit)


def _dqn_kernel(xT_ref, w1_ref, b1_ref, w2_ref, b2_ref, w3_ref, b3_ref, o_ref):
    """One batch tile; activations are (features, TILE_B): batch on lanes."""
    xT = xT_ref[...]                      # (4, TILE_B)
    w1 = w1_ref[...]                      # (64, 4)

    # ln1: Linear(4, 64) + ReLU — unrolled VPU broadcast multiply-adds.
    h1 = (w1[:, 0:1] * xT[0:1, :]
          + w1[:, 1:2] * xT[1:2, :]
          + w1[:, 2:3] * xT[2:3, :]
          + w1[:, 3:4] * xT[3:4, :]
          + b1_ref[...])                  # (64, TILE_B)
    h1 = jnp.maximum(h1, 0.0)

    # ln2: Linear(64, 64) + ReLU — MXU matmul (f32 acc).  If the wrapper passed
    # w2 as bf16 the activations are cast too; accumulation stays f32.
    h2 = jnp.dot(w2_ref[...], h1.astype(w2_ref.dtype),
                 preferred_element_type=jnp.float32) + b2_ref[...]
    h2 = jnp.maximum(h2, 0.0)             # (64, TILE_B)

    # ln3: Linear(64, 1) — VPU multiply + XLU sublane reduce.  Output tile
    # (1, TILE_B) is lane-dense (unmasked vst).
    o = jnp.sum(w3_ref[...] * h2, axis=0, keepdims=True) + b3_ref[0, 0]
    o_ref[...] = o.astype(o_ref.dtype)    # (1, TILE_B)


@partial(jax.jit, static_argnames=("tile_b", "use_bf16_matmul"))
def deep_q_network(x, params, *, tile_b=4096, use_bf16_matmul=False):
    """x: (B, 4) float32 -> (B, 1) float32."""
    w1, b1, w2, b2, w3, b3 = params
    B = x.shape[0]
    assert tile_b % LANE == 0, "tile_b must be a multiple of 128 (lane width)"

    # Balanced tiling: as few (and as equal) grid steps as possible, each a
    # multiple of 128 rows so the lane axis of every block is dense.
    n_tiles = max(1, -(-B // tile_b))             # ceil(B / tile_b)
    tb = _round_up(-(-B // n_tiles), LANE)        # rows per tile, lane-aligned
    b_pad = n_tiles * tb

    # One-time prep outside the grid (NOT re-done per tile):
    #  * problem transposed so batch sits on the lane axis,
    #  * biases / ln3 weight reshaped to column vectors (no `.T` in the body),
    #  * optional bf16 cast of the one MXU weight.
    xT = jnp.pad(x.T, ((0, 0), (0, b_pad - B)))   # (4, b_pad)
    b1c = b1.reshape(HIDDEN, 1)
    b2c = b2.reshape(HIDDEN, 1)
    w3c = w3.reshape(HIDDEN, 1)
    b3s = b3.reshape(1, 1)
    w2m = w2.astype(jnp.bfloat16) if use_bf16_matmul else w2

    flops = 2 * b_pad * (IN_FEATURES * HIDDEN + HIDDEN * HIDDEN + HIDDEN)
    bytes_accessed = (xT.size + b_pad) * 4 + sum(int(p.size) for p in params) * 4

    # Weights/biases: constant index map -> resident in VMEM across the grid.
    resident = lambda shape: pl.BlockSpec(shape, lambda i: (0, 0))

    out = pl.pallas_call(
        _dqn_kernel,
        out_shape=jax.ShapeDtypeStruct((1, b_pad), jnp.float32),
        grid=(n_tiles,),
        in_specs=[
            pl.BlockSpec((IN_FEATURES, tb), lambda i: (0, i)),       # xT tile
            resident((HIDDEN, IN_FEATURES)),                         # w1
            resident((HIDDEN, 1)),                                   # b1
            resident((HIDDEN, HIDDEN)),                              # w2
            resident((HIDDEN, 1)),                                   # b2
            resident((HIDDEN, 1)),                                   # w3 column
            pl.BlockSpec(memory_space=pltpu.MemorySpace.SMEM),       # b3 scalar
        ],
        out_specs=pl.BlockSpec((1, tb), lambda i: (0, i)),
        compiler_params=pltpu.CompilerParams(
            dimension_semantics=("parallel",),     # megacore sharding on v7x
            vmem_limit_bytes=32 * 1024 * 1024,
        ),
        cost_estimate=pl.CostEstimate(
            flops=flops, transcendentals=0, bytes_accessed=bytes_accessed),
    )(xT, w1, b1c, w2m, b2c, w3c, b3s)

    return out[:, :B].T                            # back to (B, 1)


def init_params(key):
    k1, k2, k3 = jax.random.split(key, 3)
    w1 = _xavier_uniform(k1, HIDDEN, IN_FEATURES)   # ln1 weight (out, in)
    b1 = jnp.zeros((1, HIDDEN), jnp.float32)        # ln1 bias (constant 0)
    w2 = _xavier_uniform(k2, HIDDEN, HIDDEN)        # ln2 weight
    b2 = jnp.zeros((1, HIDDEN), jnp.float32)        # ln2 bias
    w3 = _xavier_uniform(k3, 1, HIDDEN)             # ln3 weight
    b3 = jnp.zeros((1, 1), jnp.float32)             # ln3 bias
    return (w1, b1, w2, b2, w3, b3)


def reference(x, params):
    w1, b1, w2, b2, w3, b3 = params
    h = jnp.maximum(x @ w1.T + b1, 0.0)
    h = jnp.maximum(h @ w2.T + b2, 0.0)
    return h @ w3.T + b3


if __name__ == "__main__":
    key = jax.random.PRNGKey(0)
    pkey, xkey = jax.random.split(key)
    params = init_params(pkey)

    batch = 8
    x = jax.random.normal(xkey, (batch, IN_FEATURES), dtype=jnp.float32)

    # f32 MXU path by default so results match the PyTorch/f32 reference to
    # 1e-5; set use_bf16_matmul=True for the faster bf16 layer-2 matmul
    # (relax tolerance accordingly).
    out = deep_q_network(x, params)
    out = jax.block_until_ready(out)

    ref = reference(x, params)
    assert out.shape == (batch, 1), out.shape
    assert jnp.allclose(out, ref, atol=1e-5, rtol=1e-5), (out, ref)

    print("KERNEL_OK")
</pallas_src>

<mosaic_0001>
module attributes {stable_mosaic.version = 11 : i64} {
  func.func @_dqn_kernel(%arg0: i32, %arg1: memref<4x128xf32, #tpu.memory_space<vmem>>, %arg2: memref<64x4xf32, #tpu.memory_space<vmem>>, %arg3: memref<64x1xf32, #tpu.memory_space<vmem>>, %arg4: memref<64x64xf32, #tpu.memory_space<vmem>>, %arg5: memref<64x1xf32, #tpu.memory_space<vmem>>, %arg6: memref<64x1xf32, #tpu.memory_space<vmem>>, %arg7: memref<1x1xf32, #tpu.memory_space<smem>>, %arg8: memref<1x128xf32, #tpu.memory_space<vmem>>) attributes {dimension_semantics = [#tpu.dimension_semantics<parallel>], iteration_bounds = array<i64: 1>, scalar_prefetch = 0 : i64, scratch_operands = 0 : i64, tpu.core_type = #tpu.core_type<tc>, window_params = [{transform_indices = @transform_0, window_bounds = array<i64: 4, 128>}, {pipeline_mode = #tpu.pipeline_mode<synchronous>, transform_indices = @transform_1, window_bounds = array<i64: 64, 4>}, {pipeline_mode = #tpu.pipeline_mode<synchronous>, transform_indices = @transform_2, window_bounds = array<i64: 64, 1>}, {pipeline_mode = #tpu.pipeline_mode<synchronous>, transform_indices = @transform_3, window_bounds = array<i64: 64, 64>}, {pipeline_mode = #tpu.pipeline_mode<synchronous>, transform_indices = @transform_4, window_bounds = array<i64: 64, 1>}, {pipeline_mode = #tpu.pipeline_mode<synchronous>, transform_indices = @transform_5, window_bounds = array<i64: 64, 1>}, {transform_indices = @transform_6, window_bounds = array<i64: 1, 1>}, {transform_indices = @transform_7, window_bounds = array<i64: 1, 128>}]} {
    %c0 = arith.constant 0 : index
    %c0_0 = arith.constant 0 : index
    %0 = vector.load %arg1[%c0, %c0_0] : memref<4x128xf32, #tpu.memory_space<vmem>>, vector<4x128xf32>
    %c0_1 = arith.constant 0 : index
    %c0_2 = arith.constant 0 : index
    %1 = vector.load %arg2[%c0_1, %c0_2] : memref<64x4xf32, #tpu.memory_space<vmem>>, vector<64x4xf32>
    %2 = vector.extract_strided_slice %1 {offsets = [0, 0], sizes = [64, 1], strides = [1, 1]} : vector<64x4xf32> to vector<64x1xf32>
    %3 = vector.extract_strided_slice %0 {offsets = [0, 0], sizes = [1, 128], strides = [1, 1]} : vector<4x128xf32> to vector<1x128xf32>
    %4 = vector.broadcast %2 : vector<64x1xf32> to vector<64x128xf32>
    %5 = vector.broadcast %3 : vector<1x128xf32> to vector<64x128xf32>
    %6 = arith.mulf %4, %5 : vector<64x128xf32>
    %7 = vector.extract_strided_slice %1 {offsets = [0, 1], sizes = [64, 1], strides = [1, 1]} : vector<64x4xf32> to vector<64x1xf32>
    %8 = vector.extract_strided_slice %0 {offsets = [1, 0], sizes = [1, 128], strides = [1, 1]} : vector<4x128xf32> to vector<1x128xf32>
    %9 = vector.broadcast %7 : vector<64x1xf32> to vector<64x128xf32>
    %10 = vector.broadcast %8 : vector<1x128xf32> to vector<64x128xf32>
    %11 = arith.mulf %9, %10 : vector<64x128xf32>
    %12 = arith.addf %6, %11 : vector<64x128xf32>
    %13 = vector.extract_strided_slice %1 {offsets = [0, 2], sizes = [64, 1], strides = [1, 1]} : vector<64x4xf32> to vector<64x1xf32>
    %14 = vector.extract_strided_slice %0 {offsets = [2, 0], sizes = [1, 128], strides = [1, 1]} : vector<4x128xf32> to vector<1x128xf32>
    %15 = vector.broadcast %13 : vector<64x1xf32> to vector<64x128xf32>
    %16 = vector.broadcast %14 : vector<1x128xf32> to vector<64x128xf32>
    %17 = arith.mulf %15, %16 : vector<64x128xf32>
    %18 = arith.addf %12, %17 : vector<64x128xf32>
    %19 = vector.extract_strided_slice %1 {offsets = [0, 3], sizes = [64, 1], strides = [1, 1]} : vector<64x4xf32> to vector<64x1xf32>
    %20 = vector.extract_strided_slice %0 {offsets = [3, 0], sizes = [1, 128], strides = [1, 1]} : vector<4x128xf32> to vector<1x128xf32>
    %21 = vector.broadcast %19 : vector<64x1xf32> to vector<64x128xf32>
    %22 = vector.broadcast %20 : vector<1x128xf32> to vector<64x128xf32>
    %23 = arith.mulf %21, %22 : vector<64x128xf32>
    %24 = arith.addf %18, %23 : vector<64x128xf32>
    %c0_3 = arith.constant 0 : index
    %c0_4 = arith.constant 0 : index
    %25 = vector.load %arg3[%c0_3, %c0_4] : memref<64x1xf32, #tpu.memory_space<vmem>>, vector<64x1xf32>
    %26 = vector.broadcast %25 : vector<64x1xf32> to vector<64x128xf32>
    %27 = arith.addf %24, %26 : vector<64x128xf32>
    %cst = arith.constant 0.000000e+00 : f32
    %28 = vector.broadcast %cst : f32 to vector<64x128xf32>
    %29 = arith.maximumf %27, %28 : vector<64x128xf32>
    %c0_5 = arith.constant 0 : index
    %c0_6 = arith.constant 0 : index
    %30 = vector.load %arg4[%c0_5, %c0_6] : memref<64x64xf32, #tpu.memory_space<vmem>>, vector<64x64xf32>
    %cst_7 = arith.constant dense<0.000000e+00> : vector<64x128xf32>
    %31 = tpu.matmul %30, %29, %cst_7 {dimension_numbers = #tpu.dot_dimension_numbers<[1], [0], [0], [1], [0, 0, 1, 1], [], []>} : vector<64x64xf32>, vector<64x128xf32>, vector<64x128xf32> -> vector<64x128xf32>
    %c0_8 = arith.constant 0 : index
    %c0_9 = arith.constant 0 : index
    %32 = vector.load %arg5[%c0_8, %c0_9] : memref<64x1xf32, #tpu.memory_space<vmem>>, vector<64x1xf32>
    %33 = vector.broadcast %32 : vector<64x1xf32> to vector<64x128xf32>
    %34 = arith.addf %31, %33 : vector<64x128xf32>
    %cst_10 = arith.constant 0.000000e+00 : f32
    %35 = vector.broadcast %cst_10 : f32 to vector<64x128xf32>
    %36 = arith.maximumf %34, %35 : vector<64x128xf32>
    %c0_11 = arith.constant 0 : index
    %c0_12 = arith.constant 0 : index
    %37 = vector.load %arg6[%c0_11, %c0_12] : memref<64x1xf32, #tpu.memory_space<vmem>>, vector<64x1xf32>
    %38 = vector.broadcast %37 : vector<64x1xf32> to vector<64x128xf32>
    %39 = arith.mulf %38, %36 : vector<64x128xf32>
    %cst_13 = arith.constant dense<0.000000e+00> : vector<128xf32>
    %40 = vector.multi_reduction <add>, %39, %cst_13 [0] : vector<64x128xf32> to vector<128xf32>
    %41 = vector.shape_cast %40 : vector<128xf32> to vector<1x128xf32>
    %c0_14 = arith.constant 0 : index
    %c0_15 = arith.constant 0 : index
    %42 = memref.load %arg7[%c0_14, %c0_15] : memref<1x1xf32, #tpu.memory_space<smem>>
    %43 = vector.broadcast %42 : f32 to vector<1x128xf32>
    %44 = arith.addf %41, %43 : vector<1x128xf32>
    %c0_16 = arith.constant 0 : index
    %c0_17 = arith.constant 0 : index
    %45 = vector.load %arg8[%c0_16, %c0_17] : memref<1x128xf32, #tpu.memory_space<vmem>>, vector<1x128xf32>
    tpu.vector_store %arg8[%c0_16, %c0_17], %44 {strides = array<i32>} : memref<1x128xf32, #tpu.memory_space<vmem>>, vector<1x128xf32>,
    return
  }
  func.func @transform_0(%arg0: i32) -> (i32, i32) {
    %c0_i32 = arith.constant 0 : i32
    %c0_i32_0 = arith.constant 0 : i32
    return %c0_i32, %arg0 : i32, i32
  }
  func.func @transform_1(%arg0: i32) -> (i32, i32) {
    %c0_i32 = arith.constant 0 : i32
    %c0_i32_0 = arith.constant 0 : i32
    %c0_i32_1 = arith.constant 0 : i32
    return %c0_i32, %c0_i32_0 : i32, i32
  }
  func.func @transform_2(%arg0: i32) -> (i32, i32) {
    %c0_i32 = arith.constant 0 : i32
    %c0_i32_0 = arith.constant 0 : i32
    %c0_i32_1 = arith.constant 0 : i32
    return %c0_i32, %c0_i32_0 : i32, i32
  }
  func.func @transform_3(%arg0: i32) -> (i32, i32) {
    %c0_i32 = arith.constant 0 : i32
    %c0_i32_0 = arith.constant 0 : i32
    %c0_i32_1 = arith.constant 0 : i32
    return %c0_i32, %c0_i32_0 : i32, i32
  }
  func.func @transform_4(%arg0: i32) -> (i32, i32) {
    %c0_i32 = arith.constant 0 : i32
    %c0_i32_0 = arith.constant 0 : i32
    %c0_i32_1 = arith.constant 0 : i32
    return %c0_i32, %c0_i32_0 : i32, i32
  }
  func.func @transform_5(%arg0: i32) -> (i32, i32) {
    %c0_i32 = arith.constant 0 : i32
    %c0_i32_0 = arith.constant 0 : i32
    %c0_i32_1 = arith.constant 0 : i32
    return %c0_i32, %c0_i32_0 : i32, i32
  }
  func.func @transform_6(%arg0: i32) -> (i32, i32) {
    %c0_i32 = arith.constant 0 : i32
    %c0_i32_0 = arith.constant 0 : i32
    %c0_i32_1 = arith.constant 0 : i32
    return %c0_i32, %c0_i32_0 : i32, i32
  }
  func.func @transform_7(%arg0: i32) -> (i32, i32) {
    %c0_i32 = arith.constant 0 : i32
    %c0_i32_0 = arith.constant 0 : i32
    return %c0_i32, %arg0 : i32, i32
  }
}

</mosaic_0001>

<bundles_post_ra>
// kernel: deep_q_network.1
= control target key start
LH: loop header
LB: loop body
LE: loop exit
PB: predicated region body
PF: predicated region fallthrough
CT: control target
= control target key end

     0   :  { %v681_v0 = vmov 1   ;;  %v682_v4 = vmov 2   ;;  %v683_v7 = vmov 0   ;;  %v684_v8 = vmov 3   ;;  %s945_s1 = inlined_call_operand.vmem [shape: f32[64,4], index: 1, kind: input, shape index: {}]   ;;  %s946_s2 = inlined_call_operand.vmem [shape: f32[64,1], index: 2, kind: input, shape index: {}]   ;;  %s947_s4 = inlined_call_operand.vmem [shape: f32[64,1], index: 4, kind: input, shape index: {}]   ;;  %s948_s5 = inlined_call_operand.vmem [shape: f32[64,1], index: 5, kind: input, shape index: {}]   ;;  %s949_s3 = inlined_call_operand.vmem [shape: f32[64,64], index: 3, kind: input, shape index: {}]   ;;  %s950_s0 = inlined_call_operand.vmem [shape: f32[4,128], index: 0, kind: input, shape index: {}]   ;;  %s951_s6 = inlined_call_operand.<no memory space> [shape: f32[1,1], index: 6, kind: input, shape index: {}]   ;;  %s952_s7 = inlined_call_operand.vmem [shape: f32[1,128], index: 7, kind: output, shape index: {}]  }
   0x1   :  { %666 = vset.pattern.permute.xlu0 %v681_v0  ;;  %659 = vset.pattern.permute.xlu1 %v681_v0  ;;  %v32_v1 = vld [vmem:[%s945_s1 + $0x20] sm:$0xff]  ;;  %v29_v3 = vld [vmem:[%s945_s1 + $0x8] sm:$0xff]  ;;  %v31_v5 = vld [vmem:[%s945_s1 + $0x18] sm:$0xff]  ;;  %vm364_vm0 = vcmask 523264   ;;  %v76_v49 = vlaneseq }
   0x2   :  { %v28_v2 = vld [vmem:[%s945_s1] sm:$0xff]  ;;  %105 = vperm.xlu0 %666, %v32_v1   ;;  %v30_v6 = vld [vmem:[%s945_s1 + $0x10] sm:$0xff]  ;;  %v33_v10 = vld [vmem:[%s945_s1 + $0x28] sm:$0xff] }
   0x3   :  { %89 = vperm.xlu1 %659, %v28_v2   ;;  %v34_v9 = vld [vmem:[%s945_s1 + $0x30] sm:$0xff]  ;;  %v35_v11 = vld [vmem:[%s945_s1 + $0x38] sm:$0xff]  ;;  %v249_v13 = vld [vmem:[%s946_s2 + $0x28] sm:$0xff]  ;;  %v77_v51 = vshrl.u32 %v76_v49, 7 }
   0x4   :  { %v247_v12 = vld [vmem:[%s946_s2 + $0x18] sm:$0xff]  ;;  %v244_v14 = vld [vmem:[%s946_s2] sm:$0xff]  ;;  %v245_v16 = vld [vmem:[%s946_s2 + $0x8] sm:$0xff] }
   0x5   :  { %v316_v15 = vld [vmem:[%s947_s4] sm:$0xff]  ;;  %v318_v17 = vld [vmem:[%s947_s4 + $0x10] sm:$0xff]  ;;  %v321_v20 = vld [vmem:[%s947_s4 + $0x28] sm:$0xff]  ;;  %v122_v54 = vsub.s32 1, %v77_v51  ;;  %v174_v56 = vsub.s32 2, %v77_v51  ;;  %v78_v57 = vsub.s32 0, %v77_v51 }
   0x6   :  { %667 = vset.pattern.permute.xlu0 %v682_v4  ;;  %v502_v18 = vld [vmem:[%s948_s5] sm:$0xff]  ;;  %v322_v21 = vld [vmem:[%s947_s4 + $0x30] sm:$0xff]  ;;  %v323_v22 = vld [vmem:[%s947_s4 + $0x38] sm:$0xff]  ;;  %v226_v61 = vsub.s32 3, %v77_v51 }
   0x7   :  { %93 = vperm.xlu1 %659, %v29_v3   ;;  %141 = vperm.xlu0 %667, %v28_v2   ;;  %v320_v19 = vld [vmem:[%s947_s4 + $0x20] sm:$0xff]  ;;  %v508_v23 = vld [vmem:[%s948_s5 + $0x30] sm:$0xff]  ;;  %v251_v27 = vld [vmem:[%s946_s2 + $0x38] sm:$0xff] }
   0x8   :  { %v246_v24 = vld [vmem:[%s946_s2 + $0x10] sm:$0xff]  ;;  %v248_v25 = vld [vmem:[%s946_s2 + $0x20] sm:$0xff]  ;;  %v317_v28 = vld [vmem:[%s947_s4 + $0x8] sm:$0xff] }
   0x9   :  { %v250_v26 = vld [vmem:[%s946_s2 + $0x30] sm:$0xff]  ;;  %v319_v29 = vld [vmem:[%s947_s4 + $0x18] sm:$0xff]  ;;  %v308_v30 = vld [vmem:[%s949_s3] sm:$0xff] }
   0xa   :  { %v312_v31 = vld [vmem:[%s949_s3 + $0x20] sm:$0xff]  ;;  %v503_v32 = vld [vmem:[%s948_s5 + $0x8] sm:$0xff]  ;;  %619 = vmatprep.mubr.msk.f32.mxu0 %vm364_vm0, %v308_v30  ;;  %v504_v35 = vld [vmem:[%s948_s5 + $0x10] sm:$0xff] }
   0xb   :  { %660 = vset.pattern.permute.xlu1 %v682_v4  ;;  %153 = vperm.xlu0 %667, %v31_v5   ;;  %v505_v38 = vld [vmem:[%s948_s5 + $0x18] sm:$0xff]  ;;  %v506_v41 = vld [vmem:[%s948_s5 + $0x20] sm:$0xff]  ;;  %v507_v44 = vld [vmem:[%s948_s5 + $0x28] sm:$0xff] }
   0xc   :  { %145 = vperm.xlu1 %660, %v29_v3   ;;  %625 = vmatprep.mubr.msk.f32.mxu1 %vm364_vm0, %v312_v31  ;;  %v509_v47 = vld [vmem:[%s948_s5 + $0x38] sm:$0xff]  ;;  %v27_v55 = vld [vmem:[%s950_s0] sm:$0xf] }
   0xd   :  { %v864_v60 = vrot.slane %v27_v55, %v122_v54  ;;  %v867_v63 = vrot.slane %v27_v55, %v174_v56 }
   0xf   :  { %157 = vperm.xlu0 %667, %v32_v1  }
  0x10   :  { %661 = vset.pattern.permute.xlu1 %v683_v7 }
  0x11   :  { %48 = vperm.xlu1 %661, %v30_v6  }
  0x13   :  { %671 = vset.pattern.permute.xlu0 %v684_v8 }
  0x14   :  { %193 = vperm.xlu0 %671, %v28_v2  }
  0x15   :  { %662 = vset.pattern.permute.xlu1 %v681_v0 }
  0x16   :  { %97 = vperm.xlu1 %662, %v30_v6  }
  0x18   :  { %205 = vperm.xlu0 %671, %v31_v5  }
  0x1a   :  { %101 = vperm.xlu1 %662, %v31_v5  }
  0x1c   :  { %209 = vperm.xlu0 %671, %v32_v1  }
  0x1e   :  { %663 = vset.pattern.permute.xlu1 %v684_v8 }
  0x1f   :  { %197 = vperm.xlu1 %663, %v29_v3  }
  0x20   :  { %217 = vperm.xlu0 %671, %v34_v9  }
  0x23   :  { %664 = vset.pattern.permute.xlu1 %v682_v4 }
  0x24   :  { %149 = vperm.xlu1 %664, %v30_v6   ;;  %678 = vset.pattern.permute.xlu0 %v683_v7 }
  0x25   :  { %38 = vperm.xlu0 %678, %v28_v2  }
  0x28   :  { %665 = vset.pattern.permute.xlu1 %v683_v7 }
  0x29   :  { %58 = vperm.xlu1 %665, %v32_v1   ;;  %43 = vperm.xlu0 %678, %v29_v3   ;;  %v872_v3 = vrot.slane %v27_v55, %v226_v61 }
  0x2d   :  { %63 = vperm.xlu1 %665, %v33_v10   ;;  %53 = vperm.xlu0 %678, %v31_v5  }
  0x31   :  { %668 = vset.pattern.permute.xlu1 %v681_v0  ;;  %73 = vperm.xlu0 %678, %v35_v11  }
  0x32   :  { %109 = vperm.xlu1 %668, %v33_v10  }
  0x35   :  { %269 = vperm.xlu0 %678, %v247_v12  }
  0x36   :  { %669 = vset.pattern.permute.xlu1 %v684_v8 }
  0x37   :  { %201 = vperm.xlu1 %669, %v30_v6  }
  0x39   :  { %279 = vperm.xlu0 %678, %v249_v13  }
  0x3b   :  { %670 = vset.pattern.permute.xlu1 %v683_v7 }
  0x3c   :  { %254 = vperm.xlu1 %670, %v244_v14  }
  0x3d   :  { %326 = vperm.xlu0 %678, %v316_v15  }
  0x40   :  { %259 = vperm.xlu1 %670, %v245_v16  }
  0x41   :  { %336 = vperm.xlu0 %678, %v318_v17  }
  0x44   :  { %672 = vset.pattern.permute.xlu1 %v682_v4 }
  0x45   :  { %161 = vperm.xlu1 %672, %v33_v10   ;;  %512 = vperm.xlu0 %678, %v502_v18  }
  0x49   :  { %673 = vset.pattern.permute.xlu1 %v683_v7  ;;  %346 = vperm.xlu0 %678, %v320_v19  }
  0x4a   :  { %68 = vperm.xlu1 %673, %v34_v9  }
  0x4d   :  { %351 = vperm.xlu0 %678, %v321_v20  }
  0x4e   :  { %674 = vset.pattern.permute.xlu1 %v681_v0  ;;  %v869_v0 = vrot.slane %v27_v55, %v78_v57 }
  0x4f   :  { %113 = vperm.xlu1 %674, %v34_v9  }
  0x51   :  { %356 = vperm.xlu0 %678, %v322_v21  }
  0x53   :  { %117 = vperm.xlu1 %674, %v35_v11  }
  0x55   :  { %361 = vperm.xlu0 %678, %v323_v22  }
  0x57   :  { %675 = vset.pattern.permute.xlu1 %v684_v8 }
  0x58   :  { %213 = vperm.xlu1 %675, %v33_v10  }
  0x59   :  { %542 = vperm.xlu0 %678, %v508_v23  }
  0x5c   :  { %676 = vset.pattern.permute.xlu1 %v683_v7 }
  0x5d   :  { %264 = vperm.xlu1 %676, %v246_v24  }
  0x61   :  { %677 = vset.pattern.permute.xlu1 %v682_v4 }
  0x62   :  { %165 = vperm.xlu1 %677, %v34_v9  }
  0x66   :  { %169 = vperm.xlu1 %677, %v35_v11  }
  0x6a   :  { %679 = vset.pattern.permute.xlu1 %v684_v8 }
  0x6b   :  { %221 = vperm.xlu1 %679, %v35_v11  }
  0x6f   :  { %680 = vset.pattern.permute.xlu1 %v683_v7 }
  0x70   :  { %274 = vperm.xlu1 %680, %v248_v25  }
  0x74   :  { %284 = vperm.xlu1 %680, %v250_v26  }
  0x78   :  { %289 = vperm.xlu1 %680, %v251_v27  }
  0x7c   :  { %331 = vperm.xlu1 %680, %v317_v28  }
  0x80   :  { %341 = vperm.xlu1 %680, %v319_v29  }
  0x81   :  { %v106_v34 = vpop.permute.xlu0 %105 }
  0x82   :  { %v90_v33 = vpop.permute.xlu1 %89  ;;  %v128_v62 = vmul.f32 %v864_v60, %v106_v34 }
  0x83   :  { %v124_v14 = vmul.f32 %v864_v60, %v90_v33 }
  0x84   :  { %517 = vperm.xlu1 %680, %v503_v32  }
  0x86   :  { %v94_v36 = vpop.permute.xlu1 %93  ;;  %v142_v37 = vpop.permute.xlu0 %141 }
  0x87   :  { %v125_v16 = vmul.f32 %v864_v60, %v94_v36  ;;  %v176_v17 = vmul.f32 %v867_v63, %v142_v37 }
  0x88   :  { %522 = vperm.xlu1 %680, %v504_v35  }
  0x8a   :  { %v842_v40 = vpop.permute.xlu0 %153 }
  0x8b   :  { %v146_v39 = vpop.permute.xlu1 %145 }
  0x8c   :  { %527 = vperm.xlu1 %680, %v505_v38   ;;  %v177_v21 = vmul.f32 %v867_v63, %v146_v39 }
  0x8e   :  { %v158_v42 = vpop.permute.xlu0 %157 }
  0x8f   :  { %v180_v2 = vmul.f32 %v867_v63, %v158_v42  ;;  %v179_v42 = vmul.f32 %v867_v63, %v842_v40 }
  0x90   :  { %532 = vperm.xlu1 %680, %v506_v41   ;;  %v847_v43 = vpop.permute.xlu1 %48 }
  0x93   :  { %v194_v45 = vpop.permute.xlu0 %193 }
  0x94   :  { %537 = vperm.xlu1 %680, %v507_v44   ;;  %v228_v22 = vmul.f32 %v872_v3, %v194_v45 }
  0x95   :  { %v852_v46 = vpop.permute.xlu1 %97 }
  0x96   :  { %v126_v49 = vmul.f32 %v864_v60, %v852_v46 }
  0x97   :  { %v857_v48 = vpop.permute.xlu0 %205 }
  0x98   :  { %547 = vperm.xlu1 %680, %v509_v47   ;;  %v231_v51 = vmul.f32 %v872_v3, %v857_v48 }
  0x99   :  { %v102_v50 = vpop.permute.xlu1 %101 }
  0x9a   :  { %v127_v39 = vmul.f32 %v864_v60, %v102_v50 }
  0x9b   :  { %v210_v52 = vpop.permute.xlu0 %209 }
  0x9c   :  { %v232_v6 = vmul.f32 %v872_v3, %v210_v52 }
  0x9e   :  { %v198_v53 = vpop.permute.xlu1 %197 }
  0x9f   :  { %v862_v58 = vpop.permute.xlu0 %217  ;;  %v229_v26 = vmul.f32 %v872_v3, %v198_v53  ;;  %v82_v53 = vmul.f32 %v869_v0, %v847_v43 }
  0xa1   :  { %v134_v50 = vadd.f32 %v126_v49, %v82_v53 }
  0xa3   :  { %v150_v59 = vpop.permute.xlu1 %149 }
  0xa4   :  { %v39_v4 = vpop.permute.xlu0 %38  ;;  %v178_v54 = vmul.f32 %v867_v63, %v150_v59 }
  0xa5   :  { %v80_v12 = vmul.f32 %v869_v0, %v39_v4 }
  0xa6   :  { %v186_v61 = vadd.f32 %v178_v54, %v134_v50 }
  0xa7   :  { %v132_v18 = vadd.f32 %v124_v14, %v80_v12 }
  0xa8   :  { %v59_v1 = vpop.permute.xlu1 %58  ;;  %v44_v10 = vpop.permute.xlu0 %43 }
  0xa9   :  { %v84_v5 = vmul.f32 %v869_v0, %v59_v1  ;;  %v81_v15 = vmul.f32 %v869_v0, %v44_v10  ;;  %v184_v23 = vadd.f32 %v176_v17, %v132_v18 }
  0xab   :  { %v136_v7 = vadd.f32 %v128_v62, %v84_v5  ;;  %v133_v19 = vadd.f32 %v125_v16, %v81_v15  ;;  %v236_v27 = vadd.f32 %v228_v22, %v184_v23 }
  0xac   :  { %v876_v8 = vpop.permute.xlu1 %63  ;;  %v54_v36 = vpop.permute.xlu0 %53 }
  0xad   :  { %v188_v9 = vadd.f32 %v180_v2, %v136_v7  ;;  %v185_v24 = vadd.f32 %v177_v21, %v133_v19  ;;  %v83_v38 = vmul.f32 %v869_v0, %v54_v36  ;;  %v85_v43 = vmul.f32 %v869_v0, %v876_v8 }
  0xaf   :  { %v878_v11 = vadd.f32 %v232_v6, %v188_v9  ;;  %v237_v29 = vadd.f32 %v229_v26, %v185_v24  ;;  %v135_v44 = vadd.f32 %v127_v39, %v83_v38  ;;  %v313_v38 = vld [vmem:[%s949_s3 + $0x28] sm:$0xff]  ;;  %v310_v39 = vld [vmem:[%s949_s3 + $0x10] sm:$0xff] }
  0xb0   :  { %v74_v45 = vpop.permute.xlu0 %73 }
  0xb1   :  { %v110_v13 = vpop.permute.xlu1 %109  ;;  %v187_v52 = vadd.f32 %v179_v42, %v135_v44  ;;  %v87_v8 = vmul.f32 %v869_v0, %v74_v45  ;;  %v311_v42 = vld [vmem:[%s949_s3 + $0x18] sm:$0xff] }
  0xb2   :  { %v129_v7 = vmul.f32 %v864_v60, %v110_v13  ;;  %v315_v44 = vld [vmem:[%s949_s3 + $0x38] sm:$0xff] }
  0xb3   :  { %v239_v55 = vadd.f32 %v231_v51, %v187_v52 }
  0xb4   :  { %v270_v57 = vpop.permute.xlu0 %269  ;;  %v137_v10 = vadd.f32 %v129_v7, %v85_v43 }
  0xb5   :  { %v295_v62 = vadd.f32 %v270_v57, %v239_v55 }
  0xb6   :  { %v202_v20 = vpop.permute.xlu1 %201 }
  0xb7   :  { %v230_v56 = vmul.f32 %v872_v3, %v202_v20  ;;  %v303_v4 = vmax.f32 %v295_v62, 0.0 }
  0xb8   :  { %v280_v19 = vpop.permute.xlu0 %279 }
  0xb9   :  { %v238_v1 = vadd.f32 %v230_v56, %v186_v61 }
  0xbb   :  { %v255_v25 = vpop.permute.xlu1 %254 }
  0xbc   :  { %v292_v28 = vadd.f32 %v255_v25, %v236_v27  ;;  %v234_v27 = vmul.f32 %v872_v3, %v862_v58  ;;  %v327_v45 = vpop.permute.xlu0 %326 }
  0xbe   :  { %v300_v32 = vmax.f32 %v292_v28, 0.0 }
  0xbf   :  { %v260_v30 = vpop.permute.xlu1 %259 }
  0xc0   :  { %v293_v31 = vadd.f32 %v260_v30, %v237_v29  ;;  %v337_v49 = vpop.permute.xlu0 %336 }
  0xc2   :  { %v301_v33 = vmax.f32 %v293_v31, 0.0 }
  0xc4   :  { %v631_v34 = vpack.c.bf16 %v301_v33, %v300_v32  ;;  %v162_v35 = vpop.permute.xlu1 %161  ;;  %v513_v52 = vpop.permute.xlu0 %512 }
  0xc5   :  { %v181_v59 = vmul.f32 %v867_v63, %v162_v35 }
  0xc6   :  { %632 = vmatprep.subr.bf16.mxu0 %v631_v34  ;;  %647 = vmatprep.subr.bf16.mxu1 %v631_v34 }
  0xc7   :  { %634 = vmatpush3.bf16.msra.mxu0 %v631_v34  ;;  %651 = vmatpush3.bf16.msra.mxu1 %v631_v34  ;;  %v189_v14 = vadd.f32 %v181_v59, %v137_v10 }
  0xc8   :  { %v347_v54 = vpop.permute.xlu0 %346 }
  0xc9   :  { %v69_v37 = vpop.permute.xlu1 %68 }
  0xca   :  { %v86_v13 = vmul.f32 %v869_v0, %v69_v37 }
  0xcc   :  { %v352_v55 = vpop.permute.xlu0 %351 }
  0xce   :  { %v114_v41 = vpop.permute.xlu1 %113 }
  0xcf   :  { %v130_v15 = vmul.f32 %v864_v60, %v114_v41  ;;  %v314_v41 = vld [vmem:[%s949_s3 + $0x30] sm:$0xff] }
  0xd1   :  { %v138_v20 = vadd.f32 %v130_v15, %v86_v13 }
  0xd2   :  { %v118_v47 = vpop.permute.xlu1 %117 }
  0xd3   :  { %v131_v21 = vmul.f32 %v864_v60, %v118_v47 }
  0xd5   :  { %v139_v28 = vadd.f32 %v131_v21, %v87_v8 }
  0xd7   :  { %v214_v40 = vpop.permute.xlu1 %213 }
  0xd8   :  { %v233_v12 = vmul.f32 %v872_v3, %v214_v40 }
  0xda   :  { %v241_v16 = vadd.f32 %v233_v12, %v189_v14 }
  0xdc   :  { %v265_v2 = vpop.permute.xlu1 %264  ;;  %v297_v22 = vadd.f32 %v280_v19, %v241_v16 }
  0xdd   :  { %v294_v46 = vadd.f32 %v265_v2, %v238_v1 }
  0xde   :  { %v305_v31 = vmax.f32 %v297_v22, 0.0 }
  0xdf   :  { %v302_v5 = vmax.f32 %v294_v46, 0.0  ;;  %v357_v46 = vpop.permute.xlu0 %356 }
  0xe1   :  { %v635_v48 = vpack.c.bf16 %v303_v4, %v302_v5  ;;  %v166_v6 = vpop.permute.xlu1 %165 }
  0xe2   :  { %v182_v18 = vmul.f32 %v867_v63, %v166_v6 }
  0xe3   :  { %636 = vmatprep.subr.bf16.mxu0 %v635_v48  ;;  %648 = vmatprep.subr.bf16.mxu1 %v635_v48  ;;  %v362_v21 = vpop.permute.xlu0 %361 }
  0xe4   :  { %638 = vmatpush3.bf16.msra.mxu0 %v635_v48  ;;  %652 = vmatpush3.bf16.msra.mxu1 %v635_v48  ;;  %v190_v24 = vadd.f32 %v182_v18, %v138_v20 }
  0xe5   :  { %v170_v9 = vpop.permute.xlu1 %169 }
  0xe6   :  { %v183_v25 = vmul.f32 %v867_v63, %v170_v9  ;;  %v242_v34 = vadd.f32 %v234_v27, %v190_v24 }
  0xe8   :  { %v191_v0 = vadd.f32 %v183_v25, %v139_v28 }
  0xea   :  { %v222_v17 = vpop.permute.xlu1 %221 }
  0xeb   :  { %v235_v29 = vmul.f32 %v872_v3, %v222_v17  ;;  %v309_v3 = vld [vmem:[%s949_s3 + $0x8] sm:$0xff] }
  0xed   :  { %v243_v35 = vadd.f32 %v235_v29, %v191_v0  ;;  %v543_v0 = vpop.permute.xlu0 %542 }
  0xef   :  { %v275_v23 = vpop.permute.xlu1 %274 }
  0xf0   :  { %v296_v26 = vadd.f32 %v275_v23, %v878_v11 }
  0xf2   :  { %v304_v30 = vmax.f32 %v296_v26, 0.0 }
  0xf3   :  { %v285_v32 = vpop.permute.xlu1 %284 }
  0xf4   :  { %v639_v33 = vpack.c.bf16 %v305_v31, %v304_v30  ;;  %v298_v60 = vadd.f32 %v285_v32, %v242_v34 }
  0xf6   :  { %640 = vmatprep.subr.bf16.mxu0 %v639_v33  ;;  %649 = vmatprep.subr.bf16.mxu1 %v639_v33  ;;  %v306_v11 = vmax.f32 %v298_v60, 0.0 }
  0xf7   :  { %v290_v36 = vpop.permute.xlu1 %289  ;;  %642 = vmatpush3.bf16.msra.mxu0 %v639_v33  ;;  %653 = vmatpush3.bf16.msra.mxu1 %v639_v33 }
  0xf8   :  { %v299_v63 = vadd.f32 %v290_v36, %v243_v35 }
  0xfa   :  { %v307_v37 = vmax.f32 %v299_v63, 0.0 }
  0xfb   :  { %v332_v47 = vpop.permute.xlu1 %331 }
  0xfc   :  { %v643_v58 = vpack.c.bf16 %v307_v37, %v306_v11 }
  0xfe   :  { %644 = vmatprep.subr.bf16.mxu0 %v643_v58  ;;  %650 = vmatprep.subr.bf16.mxu1 %v643_v58 }
  0xff   :  { %646 = vmatpush3.bf16.msra.mxu0 %v643_v58  ;;  %654 = vmatpush3.bf16.msra.mxu1 %v643_v58  ;;  %v342_v51 = vpop.permute.xlu1 %341 }
 0x102   :  { %620 = vmatmul.mubr.msk.f32.vlgmr.msra.gmra.mrb[0].mxu0 %vm364_vm0, %v309_v3  ;;  %626 = vmatmul.mubr.msk.f32.vlgmr.msra.gmra.mrb[0].mxu1 %vm364_vm0, %v313_v38 }
 0x103   :  { %622 = vmatprep.mubr.msk.f32.mxu0 %vm364_vm0, %v310_v39  ;;  %628 = vmatprep.mubr.msk.f32.mxu1 %vm364_vm0, %v314_v41  ;;  %v518_v53 = vpop.permute.xlu1 %517  ;;  %v572_v39 = vstv %s951_s6 }
 0x106   :  { %623 = vmatmul.mubr.msk.f32.gmra.mrb[2].mxu0 %vm364_vm0, %v311_v42  ;;  %629 = vmatmul.mubr.msk.f32.gmra.mrb[2].mxu1 %vm364_vm0, %v315_v44 }
 0x107   :  { %v523_v50 = vpop.permute.xlu1 %522 }
 0x10b   :  { %v528_v56 = vpop.permute.xlu1 %527 }
 0x10f   :  { %v533_v15 = vpop.permute.xlu1 %532 }
 0x113   :  { %v538_v26 = vpop.permute.xlu1 %537 }
 0x117   :  { %v548_v60 = vpop.permute.xlu1 %547 }
 0x1d5   :  { %v621_v40 = vpop.f32.mrb[0].mxu0  ;;  %v627_v57 = vpop.f32.mrb[0].mxu1 }
 0x1d6   :  { %v461_v61 = vadd.f32 %v621_v40, %v332_v47  ;;  %v455_v62 = vpop.f32.mrb[1].mxu0  ;;  %v475_v1 = vpop.f32.mrb[1].mxu1  ;;  %v481_v16 = vadd.f32 %v627_v57, %v352_v55 }
 0x1d7   :  { %v456_v2 = vadd.f32 %v455_v62, %v327_v45  ;;  %v476_v12 = vadd.f32 %v475_v1, %v347_v54 }
 0x1d8   :  { %v495_v4 = vmax.f32 %v461_v61, 0.0  ;;  %v499_v22 = vmax.f32 %v481_v16, 0.0 }
 0x1d9   :  { %v494_v5 = vmax.f32 %v456_v2, 0.0  ;;  %v624_v48 = vpop.f32.mrb[2].mxu0  ;;  %v630_v6 = vpop.f32.mrb[2].mxu1  ;;  %v498_v19 = vmax.f32 %v476_v12, 0.0 }
 0x1da   :  { %v551_v7 = vmul.f32 %v518_v53, %v495_v4  ;;  %v471_v43 = vadd.f32 %v624_v48, %v342_v51  ;;  %v465_v59 = vpop.f32.mrb[3].mxu0  ;;  %v485_v9 = vpop.f32.mrb[3].mxu1  ;;  %v491_v24 = vadd.f32 %v630_v6, %v362_v21  ;;  %v555_v30 = vmul.f32 %v538_v26, %v499_v22 }
 0x1db   :  { %v550_v10 = vmul.f32 %v513_v52, %v494_v5  ;;  %v466_v14 = vadd.f32 %v465_v59, %v337_v49  ;;  %v486_v20 = vadd.f32 %v485_v9, %v357_v46  ;;  %v554_v27 = vmul.f32 %v533_v15, %v498_v19 }
 0x1dc   :  { %v497_v13 = vmax.f32 %v471_v43, 0.0  ;;  %v501_v31 = vmax.f32 %v491_v24, 0.0 }
 0x1dd   :  { %v558_v17 = vadd.f32 %v551_v7, %v550_v10  ;;  %v496_v18 = vmax.f32 %v466_v14, 0.0  ;;  %v500_v29 = vmax.f32 %v486_v20, 0.0 }
 0x1de   :  { %v553_v23 = vmul.f32 %v528_v56, %v497_v13  ;;  %v557_v35 = vmul.f32 %v548_v60, %v501_v31 }
 0x1df   :  { %v552_v8 = vmul.f32 %v523_v50, %v496_v18  ;;  %v556_v33 = vmul.f32 %v543_v0, %v500_v29 }
 0x1e1   :  { %v559_v25 = vadd.f32 %v558_v17, %v552_v8 }
 0x1e3   :  { %v560_v28 = vadd.f32 %v559_v25, %v553_v23 }
 0x1e5   :  { %v561_v32 = vadd.f32 %v560_v28, %v554_v27 }
 0x1e7   :  { %v562_v34 = vadd.f32 %v561_v32, %v555_v30 }
 0x1e9   :  { %v563_v36 = vadd.f32 %v562_v34, %v556_v33 }
 0x1eb   :  { %v564_v63 = vadd.f32 %v563_v36, %v557_v35 }
 0x1ed   :  { %v565_v11 = vrot.slane %v564_v63, 4 }
 0x1ef   :  { %v566_v37 = vadd.f32 %v565_v11, %v564_v63 }
 0x1f1   :  { %v567_v58 = vrot.slane %v566_v37, 2 }
 0x1f3   :  { %v568_v3 = vadd.f32 %v567_v58, %v566_v37 }
 0x1f5   :  { %v569_v38 = vrot.slane %v568_v3, 1 }
 0x1f7   :  { %v570_v41 = vadd.f32 %v569_v38, %v568_v3 }
 0x1f9   :  { %v573_v42 = vadd.f32 %v572_v39, %v570_v41 }
 0x1fb   :  { %574 = vst [vmem:[%s952_s7] sm:$0x1] %v573_v42 }

</bundles_post_ra>
